<compile_context>
chip_gen: v7x
topology: tpu7x:2x2x1
jax: 0.10.0
libtpu: 0.0.40
codegen_flags: <defaults>
</compile_context>

<pallas_src>
import functools

import jax
import jax.numpy as jnp
import numpy as np
from jax.experimental import pallas as pl
from jax.experimental.pallas import tpu as pltpu


def _round_up(a: int, m: int) -> int:
    return ((a + m - 1) // m) * m


def _choose_tile(batch: int, tile_cap: int) -> int:
    """Pick a batch-tile size: multiple of 8, <= batch, ~8 grid steps when possible."""
    cap8 = max(8, (batch // 8) * 8)                       # largest mult-of-8 <= batch
    balanced = max(256, _round_up(pl.cdiv(batch, 8), 8))  # aim for ~8 grid steps
    return max(8, min(_round_up(max(8, int(tile_cap)), 8), balanced, cap8))


def _freq_embed_kernel(x_ref, s_ref, phase_ref, o_ref, *, input_dim, include_input):
    """One batch tile of the frequency embedding.

    x_ref:     (tb, D)        input tile (VMEM)
    s_ref:     (D, D*T)       baked constant: S[d, c] = freq[c] * (c % D == d)
    phase_ref: (1, D*T)       baked constant: 0 for sin columns, pi/2 for cos
    o_ref:     (tb, out_dim)  output tile (VMEM)
    """
    x = x_ref[...].astype(jnp.float32)                     # (tb, D)

    # Broadcast-to-columns + frequency scale on the (otherwise idle) MXU.
    # Full f32 precision is required: bf16 products would corrupt sin args at
    # freq = 2**9.
    z = jnp.dot(x, s_ref[...],
                precision=jax.lax.Precision.HIGHEST,
                preferred_element_type=jnp.float32)        # (tb, D*T)
    z = z + phase_ref[...]                                 # cos(z) == sin(z + pi/2)
    emb = jnp.sin(z)                                       # single wide EUP pass

    if include_input:
        # Raw input passes through in the first D columns (narrow slice store,
        # keeps the sin slab single-use / fully fused).
        o_ref[:, :input_dim] = x.astype(o_ref.dtype)
        o_ref[:, input_dim:] = emb.astype(o_ref.dtype)
    else:
        o_ref[...] = emb.astype(o_ref.dtype)


def freq_embedder(x, n_freqs: int = 10, log_sampling: bool = True,
                  include_input: bool = True, tile_b: int = 1024):
    """Pallas wrapper matching FreqEmbedder.forward.

    x: [B, input_dim] float32 -> [B, out_dim] float32,
    out_dim = input_dim * (include_input + 2 * n_freqs).
    """
    B, D = x.shape
    n_fns = 2                                   # (sin, cos)
    T = n_freqs * n_fns                         # number of periodic terms
    out_dim = (D if include_input else 0) + D * T

    if T == 0:
        if include_input:
            # Faithful to the PyTorch module: with n_freqs == 0 the forward
            # returns the raw input unchanged.
            return x
        raise ValueError("FreqEmbedder with n_freqs=0 and include_input=False has no output.")

    # Frequency bands exactly as in the PyTorch __init__.
    if log_sampling:
        freq_bands = 2.0 ** np.linspace(0.0, n_freqs - 1, n_freqs)
    else:
        freq_bands = np.linspace(2.0 ** 0.0, 2.0 ** (n_freqs - 1), n_freqs)

    # Baked per-column constants, passed as kernel INPUTS (not closure consts).
    pcols = np.arange(D * T)
    term = pcols // D                                        # term index 0..T-1
    feat = pcols % D                                         # feature index 0..D-1
    s_mat = np.zeros((D, D * T), np.float32)
    s_mat[feat, pcols] = freq_bands[term // n_fns].astype(np.float32)
    phase = np.where(term % n_fns == 0, 0.0, np.pi / 2.0).astype(np.float32)
    s_mat = jnp.asarray(s_mat)
    phase = jnp.asarray(phase.reshape(1, D * T))

    # Batches smaller than one sublane group get a tiny row pad; everything
    # else relies on Pallas' masked ragged-last-block handling (no pad/slice
    # round-trip of the full output).
    pad_rows = 8 - B if B < 8 else 0
    x_in = jnp.pad(x, ((0, pad_rows), (0, 0))) if pad_rows else x
    b_eff = B + pad_rows

    tb = _choose_tile(b_eff, tile_b)
    grid = (pl.cdiv(b_eff, tb),)

    kernel = functools.partial(_freq_embed_kernel, input_dim=D,
                               include_input=include_input)

    out = pl.pallas_call(
        kernel,
        out_shape=jax.ShapeDtypeStruct((b_eff, out_dim), x.dtype),
        grid=grid,
        in_specs=[
            pl.BlockSpec((tb, D), lambda i: (i, 0)),
            pl.BlockSpec((D, D * T), lambda i: (0, 0)),      # constant, re-used
            pl.BlockSpec((1, D * T), lambda i: (0, 0)),      # constant, re-used
        ],
        out_specs=pl.BlockSpec((tb, out_dim), lambda i: (i, 0)),
        compiler_params=pltpu.CompilerParams(dimension_semantics=("parallel",)),
    )(x_in, s_mat, phase)
    return out[:B] if pad_rows else out


def _reference(x, n_freqs=10, log_sampling=True, include_input=True):
    """Faithful JAX port of the PyTorch forward (per-term sin/cos + concat)."""
    if n_freqs == 0:
        freq_bands = np.zeros((0,))
    elif log_sampling:
        freq_bands = 2.0 ** np.linspace(0.0, n_freqs - 1, n_freqs)
    else:
        freq_bands = np.linspace(2.0 ** 0.0, 2.0 ** (n_freqs - 1), n_freqs)
    parts = [x] if include_input else []
    for f in freq_bands:
        fx = x * jnp.float32(f)
        parts.append(jnp.sin(fx))
        parts.append(jnp.cos(fx))
    return jnp.concatenate(parts, axis=-1) if len(parts) > 1 else parts[0]


if __name__ == "__main__":
    key = jax.random.PRNGKey(0)
    k1, k2 = jax.random.split(key)

    # Case 1: canonical NeRF xyz encoding -> out_dim = 3 + 3*2*10 = 63.
    B1, D1, nf1 = 8, 3, 10
    x1 = jax.random.uniform(k1, (B1, D1), dtype=jnp.float32, minval=-1.0, maxval=1.0)
    out1 = jax.block_until_ready(freq_embedder(x1, n_freqs=nf1, log_sampling=True,
                                               include_input=True))
    ref1 = _reference(x1, n_freqs=nf1, log_sampling=True, include_input=True)
    assert out1.shape == (B1, D1 * (1 + 2 * nf1)), out1.shape
    np.testing.assert_allclose(np.asarray(out1), np.asarray(ref1), rtol=2e-3, atol=1e-3)

    # Case 2: batch not a multiple of the tile (ragged last block), linear
    # sampling, no raw input.
    B2, D2, nf2 = 100, 4, 4
    x2 = jax.random.uniform(k2, (B2, D2), dtype=jnp.float32, minval=-2.0, maxval=2.0)
    out2 = jax.block_until_ready(freq_embedder(x2, n_freqs=nf2, log_sampling=False,
                                               include_input=False))
    ref2 = _reference(x2, n_freqs=nf2, log_sampling=False, include_input=False)
    assert out2.shape == (B2, D2 * 2 * nf2), out2.shape
    np.testing.assert_allclose(np.asarray(out2), np.asarray(ref2), rtol=2e-3, atol=1e-3)

    print("KERNEL_OK")
</pallas_src>

<mosaic_0001>
module attributes {stable_mosaic.version = 11 : i64} {
  func.func @_freq_embed_kernel(%arg0: i32, %arg1: memref<8x3xf32, #tpu.memory_space<vmem>>, %arg2: memref<3x60xf32, #tpu.memory_space<vmem>>, %arg3: memref<1x60xf32, #tpu.memory_space<vmem>>, %arg4: memref<8x63xf32, #tpu.memory_space<vmem>>) attributes {dimension_semantics = [#tpu.dimension_semantics<parallel>], iteration_bounds = array<i64: 1>, scalar_prefetch = 0 : i64, scratch_operands = 0 : i64, tpu.core_type = #tpu.core_type<tc>, window_params = [{transform_indices = @transform_0, window_bounds = array<i64: 8, 3>}, {pipeline_mode = #tpu.pipeline_mode<synchronous>, transform_indices = @transform_1, window_bounds = array<i64: 3, 60>}, {pipeline_mode = #tpu.pipeline_mode<synchronous>, transform_indices = @transform_2, window_bounds = array<i64: 1, 60>}, {transform_indices = @transform_3, window_bounds = array<i64: 8, 63>}]} {
    %c0 = arith.constant 0 : index
    %c0_0 = arith.constant 0 : index
    %0 = vector.load %arg1[%c0, %c0_0] : memref<8x3xf32, #tpu.memory_space<vmem>>, vector<8x3xf32>
    %c0_1 = arith.constant 0 : index
    %c0_2 = arith.constant 0 : index
    %1 = vector.load %arg2[%c0_1, %c0_2] : memref<3x60xf32, #tpu.memory_space<vmem>>, vector<3x60xf32>
    %cst = arith.constant dense<0.000000e+00> : vector<8x60xf32>
    %2 = tpu.matmul %0, %1, %cst {dimension_numbers = #tpu.dot_dimension_numbers<[1], [0], [0], [1], [0, 0, 1, 1], [], []>, precision = #tpu.contract_precision<fp32>} : vector<8x3xf32>, vector<3x60xf32>, vector<8x60xf32> -> vector<8x60xf32>
    %c0_3 = arith.constant 0 : index
    %c0_4 = arith.constant 0 : index
    %3 = vector.load %arg3[%c0_3, %c0_4] : memref<1x60xf32, #tpu.memory_space<vmem>>, vector<1x60xf32>
    %4 = vector.broadcast %3 : vector<1x60xf32> to vector<8x60xf32>
    %5 = arith.addf %2, %4 : vector<8x60xf32>
    %6 = math.sin %5 : vector<8x60xf32>
    %c0_5 = arith.constant 0 : index
    %c0_6 = arith.constant 0 : index
    %7 = vector.load %arg4[%c0_5, %c0_6] : memref<8x63xf32, #tpu.memory_space<vmem>>, vector<8x3xf32>
    tpu.vector_store %arg4[%c0_5, %c0_6], %0 {strides = array<i32>} : memref<8x63xf32, #tpu.memory_space<vmem>>, vector<8x3xf32>,
    %c0_7 = arith.constant 0 : index
    %c3 = arith.constant 3 : index
    %8 = vector.load %arg4[%c0_7, %c3] : memref<8x63xf32, #tpu.memory_space<vmem>>, vector<8x60xf32>
    tpu.vector_store %arg4[%c0_7, %c3], %6 {strides = array<i32>} : memref<8x63xf32, #tpu.memory_space<vmem>>, vector<8x60xf32>,
    return
  }
  func.func @transform_0(%arg0: i32) -> (i32, i32) {
    %c0_i32 = arith.constant 0 : i32
    %c0_i32_0 = arith.constant 0 : i32
    return %arg0, %c0_i32 : i32, i32
  }
  func.func @transform_1(%arg0: i32) -> (i32, i32) {
    %c0_i32 = arith.constant 0 : i32
    %c0_i32_0 = arith.constant 0 : i32
    %c0_i32_1 = arith.constant 0 : i32
    return %c0_i32, %c0_i32_0 : i32, i32
  }
  func.func @transform_2(%arg0: i32) -> (i32, i32) {
    %c0_i32 = arith.constant 0 : i32
    %c0_i32_0 = arith.constant 0 : i32
    %c0_i32_1 = arith.constant 0 : i32
    return %c0_i32, %c0_i32_0 : i32, i32
  }
  func.func @transform_3(%arg0: i32) -> (i32, i32) {
    %c0_i32 = arith.constant 0 : i32
    %c0_i32_0 = arith.constant 0 : i32
    return %arg0, %c0_i32 : i32, i32
  }
}

</mosaic_0001>

<bundles_post_ra>
// kernel: tpu_custom_call.1
= control target key start
LH: loop header
LB: loop body
LE: loop exit
PB: predicated region body
PF: predicated region fallthrough
CT: control target
= control target key end

     0   :  { %vm28_vm0 = vcmask 1042432   ;;  %v702_v2 = vmov 0.0   ;;  %vm703_vm1 = vmmov 0   ;;  %vm24_vm2 = vcmask 23552   ;;  %s780_s0 = inlined_call_operand.vmem [shape: f32[8,3], index: 0, kind: input, shape index: {}]   ;;  %s781_s1 = inlined_call_operand.vmem [shape: f32[3,60], index: 1, kind: input, shape index: {}]   ;;  %s782_s2 = inlined_call_operand.vmem [shape: f32[1,60], index: 2, kind: input, shape index: {}]   ;;  %s783_s3 = inlined_call_operand.hbm [shape: f32[8,63], index: 3, kind: output, shape index: {}]  }
   0x1   :  { %v16_v0 = vld [vmem:[%s781_s1] sm:$0x7]  ;;  %635 = vmatprep.subr.mxu0 %v702_v2  ;;  %637 = vmatprep.mubr.msk.f32.mxu0 %vm703_vm1, %v702_v2 }
   0x2   :  { %v15_v1 = vld [vmem:[%s780_s0] sm:$0xff]  ;;  %v30_v3 = vsel %vm28_vm0, %v16_v0, 0 }
   0x3   :  { %8 = vsyncpa [#allocation3], 0  ;;  %v33_v4 = vand.u32 4294901760, %v30_v3  ;;  %v26_v5 = vsel %vm24_vm2, %v15_v1, 0  ;;  %582 = vst.msk [vmem:[#allocation2] sm:$0xff] %vm24_vm2, %v15_v1  ;;  %620 = vmatprep.subr.mxu1 %v702_v2  ;;  %622 = vmatprep.mubr.msk.f32.mxu1 %vm703_vm1, %v702_v2  ;;  %s711_s16 = smov [#allocation2]  }
   0x4   :  { %v98_v6 = vand.u32 4294901760, %v26_v5  ;;  %v603_v17 = vld [vmem:[%s782_s2] ss:$0 sm:$0xff]  ;;  %v704_v32 = vmov 683565275   ;;  %s710_s2 = smov 3  }
   0x5   :  { %v110_v7 = vsub.f32 %v30_v3, %v33_v4  ;;  %636 = vmatpush3.msra.mxu0 %v33_v4  ;;  %621 = vmatpush3.msra.mxu1 %v33_v4  ;;  %v705_v34 = vmov 2475754826   ;;  %v706_v37 = vmov 2131351028   ;;  %v707_v40 = vmov 2102212464  }
   0x6   :  { %v99_v8 = vsub.f32 %v26_v5, %v98_v6  ;;  %625 = vmatprep.subr.mxu1 %v702_v2  ;;  %640 = vmatprep.subr.mxu0 %v702_v2  ;;  %v708_v43 = vmov 920167782   ;;  %v709_v46 = vmov 1326507024   ;;  %s595_s17 = sshll.u32 %s711_s16, 4  ;;  %vm587_vm0 = vcmask 515096   ;;  %s596_s17 = int_to_ptr.vmem [resolvable:$true] %s595_s17 }
   0x7   :  { %v111_v9 = vand.u32 4294901760, %v110_v7  ;;  %s678_s18 = scalar_lea.vmem %s596_s17, 128  ;;  %p683_p1 = scmp.lt.s32.totalorder %s596_s17, %s596_s17 }
   0x8   :  { %v100_v10 = vand.u32 4294901760, %v99_v8  ;;  %p679_p0 = scmp.ne.s32.totalorder %s596_s17, %s678_s18  ;;  %p684_p2 = scmp.lt.s32.totalorder %s678_s18, %s678_s18 }
   0x9   :  { %v112_v11 = vsub.f32 %v110_v7, %v111_v9 }
   0xa   :  { %638 = vmatmul.mubr.f32.vlgmr.msra.gmra.mrb[0].mxu0 %v100_v10  ;;  %v101_v12 = vsub.f32 %v99_v8, %v100_v10  ;;  %p685_p3 = por %p684_p2, %p683_p1 }
   0xb   :  { %v113_v13 = vand.u32 4294901760, %v112_v11  ;;  %641 = vmatpush3.msra.mxu0 %v111_v9  ;;  %642 = vmatprep.mubr.msk.f32.mxu0 %vm703_vm1, %v702_v2 }
   0xc   :  { %v102_v14 = vand.u32 4294901760, %v101_v12  ;;  %645 = vmatprep.subr.mxu0 %v702_v2  ;;  %p686_p4 = pnand %p685_p3, %p679_p0 }
   0xe   :  { %623 = vmatmul.mubr.f32.vlgmr.msra.gmra.mrb[0].mxu1 %v102_v14 }
   0xf   :  { %626 = vmatpush3.msra.mxu1 %v113_v13  ;;  %627 = vmatprep.mubr.msk.f32.mxu1 %vm703_vm1, %v702_v2 }
  0x10   :  { %630 = vmatprep.subr.mxu1 %v702_v2 }
  0x12   :  { %643 = vmatmul.mubr.f32.vlgmr.msra.gmra.mrb[0].mxu0 %v98_v6 }
  0x13   :  { %646 = vmatpush3.msra.mxu0 %v33_v4  ;;  %647 = vmatprep.mubr.msk.f32.mxu0 %vm703_vm1, %v702_v2 }
  0x16   :  { %628 = vmatmul.mubr.f32.vlgmr.msra.gmra.mrb[0].mxu1 %v98_v6 }
  0x17   :  { %631 = vmatpush3.msra.mxu1 %v110_v7  ;;  %632 = vmatprep.mubr.msk.f32.mxu1 %vm703_vm1, %v702_v2 }
  0x1a   :  { %648 = vmatmul.mubr.f32.vlgmr.msra.gmra.mrb[0].mxu0 %v98_v6 }
  0x1e   :  { %633 = vmatmul.mubr.f32.vlgmr.msra.gmra.mrb[0].mxu1 %v99_v8 }
  0xed   :  { %v474_v15 = vpop.f32.mrb[0].mxu0 }
  0xee   :  { %v649_v16 = vpop.f32.mrb[1].mxu0 }
  0xf1   :  { %v254_v18 = vpop.f32.mrb[0].mxu1 }
  0xf2   :  { %v650_v19 = vadd.f32 %v603_v17, %v254_v18  ;;  %v634_v20 = vpop.f32.mrb[1].mxu1 }
  0xf4   :  { %v747_v21 = vadd.f32 %v650_v19, %v474_v15 }
  0xf6   :  { %v481_v22 = vand.u32 2139095040, %v747_v21  ;;  %v478_v26 = vand.u32 2147483647, %v747_v21  ;;  %vm480_vm10 = vcmp.lt.s32.totalorder %v747_v21, 0  ;;  %vm570_vm15 = vweird.f32 %v747_v21 }
  0xf8   :  { %v482_v23 = vshrl.u32 %v481_v22, 23  ;;  %v485_v30 = vand.u32 8388607, %v478_v26  ;;  %vm479_vm11 = vcmp.le.f32.partialorder %v478_v26, 0.7853982 }
  0xfa   :  { %v604_v24 = vadd.s32 4294967169, %v482_v23  ;;  %v486_v48 = vor.u32 8388608, %v485_v30 }
  0xfc   :  { %v488_v25 = vadd.s32 1, %v604_v24  ;;  %v526_v62 = vshll.u32 %v486_v48, 8 }
  0xfe   :  { %vm489_vm3 = vcmp.gt.s32.totalorder %v488_v25, 0 }
  0xff   :  { %v490_v27 = vsel %vm489_vm3, %v488_v25, 0 }
 0x100   :  { %v492_v28 = vand.u32 31, %v490_v27  ;;  %v491_v31 = vshrl.u32 %v490_v27, 5 }
 0x102   :  { %v493_v29 = vsub.s32 32, %v492_v28  ;;  %v495_v33 = vshll.u32 %v704_v32, %v492_v28  ;;  %v498_v35 = vshll.u32 %v705_v34, %v492_v28  ;;  %v501_v39 = vshll.u32 %v706_v37, %v492_v28 }
 0x103   :  { %v504_v42 = vshll.u32 %v707_v40, %v492_v28  ;;  %v507_v45 = vshll.u32 %v708_v43, %v492_v28  ;;  %vm510_vm4 = vcmp.lt.s32.totalorder %v491_v31, 1  ;;  %vm513_vm5 = vcmp.lt.s32.totalorder %v491_v31, 4 }
 0x104   :  { %v496_v36 = vshrl.u32 %v705_v34, %v493_v29  ;;  %v499_v38 = vshrl.u32 %v706_v37, %v493_v29  ;;  %v502_v41 = vshrl.u32 %v707_v40, %v493_v29  ;;  %v505_v44 = vshrl.u32 %v708_v43, %v493_v29 }
 0x105   :  { %v508_v47 = vshrl.u32 %v709_v46, %v493_v29  ;;  %v494_v57 = vshrl.u32 %v704_v32, %v493_v29  ;;  %vm512_vm6 = vcmp.lt.s32.totalorder %v491_v31, 3  ;;  %vm511_vm7 = vcmp.lt.s32.totalorder %v491_v31, 2 }
 0x106   :  { %v497_v49 = vor.u32 %v496_v36, %v495_v33  ;;  %v500_v50 = vor.u32 %v499_v38, %v498_v35  ;;  %v503_v51 = vor.u32 %v502_v41, %v501_v39  ;;  %v506_v52 = vor.u32 %v505_v44, %v504_v42 }
 0x107   :  { %v509_v53 = vor.u32 %v508_v47, %v507_v45 }
 0x108   :  { %v515_v54 = vsel %vm513_vm5, %v503_v51, 2102212464  ;;  %v518_v55 = vsel %vm510_vm4, %v497_v49, %v500_v50  ;;  %v522_v56 = vsel %vm510_vm4, %v500_v50, %v503_v51  ;;  %v519_v58 = vsel %vm513_vm5, %v506_v52, 920167782 }
 0x109   :  { %v523_v59 = vsel %vm513_vm5, %v509_v53, 1326507024  ;;  %v520_v60 = vsel %vm512_vm6, %v503_v51, %v519_v58  ;;  %v514_v63 = vsel %vm510_vm4, %v494_v57, %v497_v49  ;;  %v516_v0 = vsel %vm512_vm6, %v500_v50, %v515_v54 }
 0x10a   :  { %v524_v61 = vsel %vm512_vm6, %v506_v52, %v523_v59  ;;  %v521_v1 = vsel %vm511_vm7, %v518_v55, %v520_v60  ;;  %v517_v7 = vsel %vm511_vm7, %v514_v63, %v516_v0 }
 0x10b   :  { %v525_v2 = vsel %vm511_vm7, %v522_v56, %v524_v61  ;;  %v756_v5 = vmul.u32.u64.low %v526_v62, %v521_v1  ;;  %v757_v6 = vmul.u32.u64.high %v526_v62, %v521_v1, %v756_v5  ;;  %v533_v9 = vmul.u32 %v526_v62, %v517_v7 }
 0x10c   :  { %v753_v3 = vmul.u32.u64.low %v526_v62, %v525_v2  ;;  %v754_v4 = vmul.u32.u64.high %v526_v62, %v525_v2, %v753_v3 }
 0x10d   :  { %v536_v8 = vadd.s32 1, %v757_v6 }
 0x10e   :  { %vm535_vm8 = vc.u32 %v754_v4, %v756_v5  ;;  %v534_v22 = vadd.s32 %v756_v5, %v754_v4 }
 0x10f   :  { %v537_v10 = vsel %vm535_vm8, %v536_v8, %v757_v6 }
 0x110   :  { %v538_v11 = vadd.s32 %v537_v10, %v533_v9 }
 0x112   :  { %v539_v12 = vadd.s32 536870912, %v538_v11 }
 0x114   :  { %v540_v13 = vshrl.u32 %v539_v12, 30 }
 0x116   :  { %v541_v14 = vshll.u32 %v540_v13, 30  ;;  %v564_v35 = vsub.s32 4, %v540_v13 }
 0x118   :  { %v542_v15 = vsub.s32 %v538_v11, %v541_v14  ;;  %v565_v38 = vsel %vm480_vm10, %v564_v35, %v540_v13 }
 0x119   :  { %v567_v40 = vsel %vm479_vm11, 0, %v565_v38 }
 0x11a   :  { %v544_v16 = vsub.s32 0, %v542_v15  ;;  %v571_v41 = vadd.s32 3, %v567_v40 }
 0x11c   :  { %v605_v17 = vmin.u32 %v544_v16, %v542_v15  ;;  %v572_v42 = vand.u32 3, %v571_v41 }
 0x11e   :  { %v546_v18 = vclz %v605_v17  ;;  %vm577_vm12 = vcmp.eq.s32.totalorder %v572_v42, 2  ;;  %vm574_vm13 = vcmp.eq.s32.totalorder %v572_v42, 0  ;;  %vm573_vm14 = vcmp.lt.s32.totalorder %v572_v42, 2 }
 0x120   :  { %v606_v19 = vadd.s32 4294967294, %v546_v18 }
 0x122   :  { %vm607_vm9 = vcmp.lt.s32.totalorder %v606_v19, 0 }
 0x123   :  { %v549_v20 = vsel %vm607_vm9, 0, %v606_v19 }
 0x124   :  { %v550_v23 = vsub.s32 32, %v549_v20  ;;  %v554_v24 = vsub.s32 4294967266, %v549_v20  ;;  %v551_v25 = vshll.u32 %v542_v15, %v549_v20 }
 0x126   :  { %v552_v27 = vshrl.u32 %v534_v22, %v550_v23  ;;  %v555_v28 = vadd.s32 127, %v554_v24 }
 0x128   :  { %v553_v29 = vor.u32 %v552_v27, %v551_v25  ;;  %v556_v30 = vshll.u32 %v555_v28, 23 }
 0x12a   :  { %v557_v31 = vor.u32 4788187, %v556_v30  ;;  %v560_v33 = vcvt.s32.f32 %v553_v29 }
 0x12c   :  { %v558_v32 = vand.u32 2147483647, %v557_v31 }
 0x12e   :  { %v561_v34 = vmul.f32 %v560_v33, %v558_v32 }
 0x130   :  { %v562_v36 = vxor.u32 2147483648, %v561_v34 }
 0x132   :  { %v563_v37 = vsel %vm480_vm10, %v562_v36, %v561_v34 }
 0x133   :  { %v566_v39 = vsel %vm479_vm11, %v747_v21, %v563_v37 }
 0x134   :  { %674 = vcosq.f32 %v566_v39 }
 0x135   :  { %676 = vsinq.f32 %v566_v39 }
 0x13e   :  { %v675_v43 = vpop.eup %674 }
 0x13f   :  { %v677_v44 = vpop.eup %676  ;;  %v578_v45 = vxor.u32 2147483648, %v675_v43 }
 0x140   :  { %v575_v46 = vxor.u32 2147483648, %v677_v44 }
 0x141   :  { %v579_v47 = vsel %vm577_vm12, %v578_v45, %v677_v44 }
 0x142   :  { %v576_v48 = vsel %vm574_vm13, %v675_v43, %v575_v46 }
 0x143   :  { %v580_v26 = vsel %vm573_vm14, %v576_v48, %v579_v47 }
 0x144   :  { %v581_v49 = vsel %vm570_vm15, nan, %v580_v26 }
 0x145   :  { %584 = vrot.lane.b32.xlu0 %v581_v49, %s710_s2 }
 0x1b7   :  { %v585_v50 = vpop.permute.xlu0 %584 }
 0x1b8   :  { %588 = vst.msk [vmem:[#allocation2] sm:$0xff] %vm587_vm0, %v585_v50 }
 0x1b9   :  { %689 = shalt.err (!%p686_p4)
}
 0x1ba   :  { %s690_s21 = scalar_lea.hbm %s783_s3, 128 }
 0x1bb   :  { %p691_p5 = scmp.ne.s32.totalorder %s783_s3, %s690_s21  ;;  %p694_p6 = scmp.lt.u32.totalorder %s690_s21, %s783_s3 }
 0x1bd   :  { %p696_p7 = pnand %p694_p6, %p691_p5 }
 0x1bf   :  { %699 = shalt.err (!%p696_p7)
}
 0x1c0   :  { %598 = dma.vmem_to_hbm [thread:$0]  %s596_s17, 128, %s783_s3, [#allocation3]  }
 0x1c1   :  { %700 = dma.done.wait [#allocation3], 128  }
 0x1c2   :  { %701 = vsyncadd [#allocation3], 4294967168 }
 0x1c3   :  { %602 = vsyncpa [#allocation3], 1 }

</bundles_post_ra>
